<compile_context>
chip_gen: v7x
topology: tpu7x:2x2x1
jax: 0.10.0
libtpu: 0.0.40
codegen_flags: <defaults>
</compile_context>

<pallas_src>
import numpy as np

import jax
import jax.numpy as jnp
from jax.experimental import pallas as pl
from jax.experimental.pallas import tpu as pltpu

_SQRT_2_OVER_PI = 0.7978845608028654


def _new_gelu(h):
    # NewGELU: 0.5 * x * (1 + tanh(sqrt(2/pi) * (x + 0.044715 * x^3))), in f32.
    return 0.5 * h * (1.0 + jnp.tanh(_SQRT_2_OVER_PI * (h + 0.044715 * (h * h * h))))


def _resident_kernel(x_ref, wfc_ref, bfc_ref, wproj_ref, bproj_ref, o_ref):
    """Whole-I fused MLP; W_fc / W_proj stay resident in VMEM across token tiles."""
    h = jnp.dot(x_ref[...], wfc_ref[...], preferred_element_type=jnp.float32)
    h = h + bfc_ref[...]
    g = _new_gelu(h)
    out = jnp.dot(g.astype(wproj_ref.dtype), wproj_ref[...],
                  preferred_element_type=jnp.float32)
    o_ref[...] = (out + bproj_ref[...]).astype(o_ref.dtype)


def _acc_kernel(x_ref, wfc_ref, bfc_ref, wproj_ref, bproj_ref, o_ref, acc_ref):
    """I-tiled MLP with an f32 (tm, H) accumulator over the reduction grid axis."""
    j = pl.program_id(1)

    h = jnp.dot(x_ref[...], wfc_ref[...], preferred_element_type=jnp.float32)
    h = h + bfc_ref[...]
    g = _new_gelu(h)
    partial = jnp.dot(g.astype(wproj_ref.dtype), wproj_ref[...],
                      preferred_element_type=jnp.float32)

    @pl.when(j == 0)
    def _first():           # direct write of the first partial (no zero-init pass)
        acc_ref[...] = partial

    @pl.when(j != 0)
    def _rest():
        acc_ref[...] += partial

    @pl.when(j == pl.num_programs(1) - 1)
    def _finalize():
        o_ref[...] = (acc_ref[...] + bproj_ref[...]).astype(o_ref.dtype)


def _round_up(x, m):
    return ((x + m - 1) // m) * m


def _vmem_capacity_bytes():
    try:
        return int(pltpu.get_tpu_info().vmem_capacity_bytes)
    except Exception:
        pass
    try:
        kind = jax.devices()[0].device_kind.lower()
        if ("v7" in kind) or ("tpu7" in kind):
            return 64 << 20
        if any(v in kind for v in ("v4", "v5", "v6")):
            return 128 << 20
    except Exception:
        pass
    return 64 << 20  # conservative default


def _choose_tm(T):
    # Token tile: >=512 for long sequences (arithmetic intensity above the
    # v6e/v7x HBM/MXU crossover when weights are streamed), 256-aligned for the
    # 2x256^2 MXU, 16-aligned (bf16 sublane packing) when T is small.
    if T >= 1024:
        return 512
    if T >= 512:
        return 512 if (_round_up(T, 512) - T) <= (_round_up(T, 256) - T) else 256
    if T > 256:
        return 256
    return _round_up(T, 16) if T > 8 else _round_up(max(T, 1), 8)


def _tile_bytes_resident(tm, H, I, in_bytes, out_bytes):
    return (2 * tm * H * in_bytes          # x token tiles (double-buffered)
            + 2 * H * I * in_bytes         # W_fc (conservatively assume 2 buffers)
            + 2 * I * H * in_bytes         # W_proj
            + 2 * (I + H) * 4              # biases (f32)
            + 2 * tm * H * out_bytes       # out tiles
            + 4 * tm * I * 4)              # live f32 (tm, I) intermediates


def _tile_bytes_tiled(tm, ti, H, in_bytes, out_bytes):
    return (2 * tm * H * in_bytes          # x token tiles
            + 2 * H * ti * in_bytes        # W_fc slabs
            + 2 * ti * H * in_bytes        # W_proj slabs
            + 2 * (ti + H) * 4             # bias slabs (f32)
            + 2 * tm * H * out_bytes       # out tiles
            + tm * H * 4                   # f32 accumulator scratch
            + 4 * tm * ti * 4)             # live f32 (tm, ti) intermediates


def _plan_tiles(T, H, I, in_bytes, out_bytes, budget, tm, ti):
    """Returns (tm, ti, resident). resident=True means ti == padded I and the
    reduction grid axis is dropped (weights stay resident in VMEM)."""
    if tm is None:
        tm = _choose_tm(T)
    if ti is not None:
        ti = min(_round_up(ti, 128), _round_up(I, 128))
        resident = ti >= I
        return tm, (I if resident else ti), resident

    if _tile_bytes_resident(tm, H, I, in_bytes, out_bytes) <= budget:
        return tm, I, True

    # Tiled path: largest 256-aligned ti that fits the budget (128 floor).
    ti = max(256, _round_up(I, 256))
    while ti > 256 and _tile_bytes_tiled(tm, ti, H, in_bytes, out_bytes) > budget:
        ti -= 256
    if _tile_bytes_tiled(tm, ti, H, in_bytes, out_bytes) > budget:
        ti = 128
    while _tile_bytes_tiled(tm, ti, H, in_bytes, out_bytes) > budget and tm > 64:
        tm //= 2  # last resort: shrink the token tile
    return tm, ti, False


def gpt2_mlp(hidden_states, w_fc, b_fc, w_proj, b_proj, *,
             tm=None, ti=None, compute_dtype=jnp.bfloat16):
    """Fused GPT2 MLP forward.

    hidden_states: [T, H]; w_fc: [H, I]; b_fc: [I]; w_proj: [I, H]; b_proj: [H].
    Returns [T, H] in hidden_states.dtype. Passing ti < I forces the I-tiled
    (accumulator) path.
    """
    T, H = hidden_states.shape
    I = w_fc.shape[1]
    assert w_fc.shape == (H, I)
    assert w_proj.shape == (I, H)
    assert b_fc.shape == (I,)
    assert b_proj.shape == (H,)

    out_dtype = hidden_states.dtype
    in_bytes = np.dtype(compute_dtype).itemsize
    out_bytes = np.dtype(out_dtype).itemsize

    cap = _vmem_capacity_bytes()
    budget = cap - max(16 << 20, cap // 4)   # ~96 MiB on v5e/v6e, ~48 MiB on v7x

    tm, ti, resident = _plan_tiles(T, H, I, in_bytes, out_bytes, budget, tm, ti)

    T_pad = _round_up(T, tm)
    I_pad = I if resident else _round_up(I, ti)

    # MXU operands in compute_dtype; biases + accumulation stay f32.
    x = hidden_states.astype(compute_dtype)
    if T_pad != T:
        x = jnp.pad(x, ((0, T_pad - T), (0, 0)))     # padded rows sliced off later
    wfc = w_fc.astype(compute_dtype)
    wproj = w_proj.astype(compute_dtype)
    bfc = b_fc.astype(jnp.float32)
    bproj = b_proj.astype(jnp.float32).reshape(1, H)
    if I_pad != I:
        # Zero-padded intermediate columns contribute exactly 0 to the output
        # (GELU(0)=0 and the matching W_proj rows are zero).
        wfc = jnp.pad(wfc, ((0, 0), (0, I_pad - I)))
        wproj = jnp.pad(wproj, ((0, I_pad - I), (0, 0)))
        bfc = jnp.pad(bfc, ((0, I_pad - I),))
    bfc = bfc.reshape(1, I_pad)

    # VMEM footprint / scoped limit (never clamped below the estimate).
    est = (_tile_bytes_resident(tm, H, I_pad, in_bytes, out_bytes) if resident
           else _tile_bytes_tiled(tm, ti, H, in_bytes, out_bytes))
    vmem_limit = int(min(max(int(1.2 * est) + (4 << 20), 32 << 20), cap - (8 << 20)))

    # Advisory cost estimate (counts weight re-streaming on the tiled path).
    wt_factor = 1 if resident else max(1, T_pad // tm)
    cost = pl.CostEstimate(
        flops=4 * T_pad * H * I_pad,
        transcendentals=T_pad * I_pad,
        bytes_accessed=(T_pad * H * in_bytes
                        + wt_factor * 2 * H * I_pad * in_bytes
                        + wt_factor * (I_pad + H) * 4
                        + T_pad * H * out_bytes))

    def _run(single_buffer):
        pm = {"pipeline_mode": pl.Buffered(1)} if single_buffer else {}
        if resident:
            grid = (T_pad // tm,)
            kernel = _resident_kernel
            in_specs = [
                pl.BlockSpec((tm, H), lambda i: (i, 0)),                 # x tile
                pl.BlockSpec((H, I_pad), lambda i: (0, 0), **pm),        # W_fc (resident)
                pl.BlockSpec((1, I_pad), lambda i: (0, 0), **pm),        # b_fc
                pl.BlockSpec((I_pad, H), lambda i: (0, 0), **pm),        # W_proj (resident)
                pl.BlockSpec((1, H), lambda i: (0, 0), **pm),            # b_proj
            ]
            out_specs = pl.BlockSpec((tm, H), lambda i: (i, 0))
            scratch = []
            dims = ("parallel",)
        else:
            grid = (T_pad // tm, I_pad // ti)
            kernel = _acc_kernel
            in_specs = [
                pl.BlockSpec((tm, H), lambda i, j: (i, 0), **pm),        # x tile (j-invariant)
                pl.BlockSpec((H, ti), lambda i, j: (0, j)),              # W_fc slab
                pl.BlockSpec((1, ti), lambda i, j: (0, j)),              # b_fc slab
                pl.BlockSpec((ti, H), lambda i, j: (j, 0)),              # W_proj slab
                pl.BlockSpec((1, H), lambda i, j: (0, 0), **pm),         # b_proj (invariant)
            ]
            out_specs = pl.BlockSpec((tm, H), lambda i, j: (i, 0))
            scratch = [pltpu.VMEM((tm, H), jnp.float32)]
            dims = ("parallel", "arbitrary")

        return pl.pallas_call(
            kernel,
            out_shape=jax.ShapeDtypeStruct((T_pad, H), out_dtype),
            grid_spec=pltpu.PrefetchScalarGridSpec(
                num_scalar_prefetch=0,
                grid=grid,
                in_specs=in_specs,
                out_specs=out_specs,
                scratch_shapes=scratch),
            compiler_params=pltpu.CompilerParams(
                dimension_semantics=dims,
                vmem_limit_bytes=vmem_limit),
            cost_estimate=cost,
        )(x, wfc, bfc, wproj, bproj)

    try:
        out = _run(True)
    except Exception:
        # pipeline_mode=pl.Buffered(1) unsupported on this jax/Mosaic version;
        # the default double-buffered specs are functionally identical.
        out = _run(False)

    if T_pad != T:
        out = out[:T]
    return out


def gpt2_mlp_ref(x, w_fc, b_fc, w_proj, b_proj):
    hp = jax.lax.Precision.HIGHEST
    xf = x.astype(jnp.float32)
    h = jnp.dot(xf, w_fc.astype(jnp.float32), precision=hp) + b_fc.astype(jnp.float32)
    g = 0.5 * h * (1.0 + jnp.tanh(_SQRT_2_OVER_PI * (h + 0.044715 * h ** 3)))
    out = jnp.dot(g, w_proj.astype(jnp.float32), precision=hp) + b_proj.astype(jnp.float32)
    return out.astype(x.dtype)


def _make_inputs(key, T, H, I):
    kx, kfc, kbfc, kpj, kbpj, key = jax.random.split(key, 6)
    x = jax.random.normal(kx, (T, H), dtype=jnp.float32)
    w_fc = jax.random.normal(kfc, (H, I), dtype=jnp.float32) * 0.02
    b_fc = jax.random.normal(kbfc, (I,), dtype=jnp.float32) * 0.02
    w_proj = jax.random.normal(kpj, (I, H), dtype=jnp.float32) * 0.02
    b_proj = jax.random.normal(kbpj, (H,), dtype=jnp.float32) * 0.02
    return (x, w_fc, b_fc, w_proj, b_proj), key


if __name__ == "__main__":
    key = jax.random.PRNGKey(0)

    # --- Test 1: small GPT-2-like config, f32 compute path, resident weights. ---
    (x, w_fc, b_fc, w_proj, b_proj), key = _make_inputs(key, T=8, H=32, I=128)
    out = jax.block_until_ready(
        gpt2_mlp(x, w_fc, b_fc, w_proj, b_proj, compute_dtype=jnp.float32))
    ref = gpt2_mlp_ref(x, w_fc, b_fc, w_proj, b_proj)
    assert out.shape == (8, 32)
    assert jnp.allclose(out, ref, atol=2e-3, rtol=2e-3), "f32 mismatch vs reference"

    # --- Test 2: bf16 MXU path, token padding + two token tiles, resident weights. ---
    (x2, w_fc2, b_fc2, w_proj2, b_proj2), key = _make_inputs(key, T=300, H=128, I=512)
    out2 = jax.block_until_ready(gpt2_mlp(x2, w_fc2, b_fc2, w_proj2, b_proj2))
    ref2 = gpt2_mlp_ref(x2, w_fc2, b_fc2, w_proj2, b_proj2)
    assert out2.shape == (300, 128)
    assert jnp.allclose(out2, ref2, atol=3e-2, rtol=3e-2), "bf16 mismatch vs reference"

    # --- Test 3: forced I-tiling (accumulator kernel) + token padding. ---
    (x3, w_fc3, b_fc3, w_proj3, b_proj3), key = _make_inputs(key, T=192, H=128, I=1024)
    out3 = jax.block_until_ready(
        gpt2_mlp(x3, w_fc3, b_fc3, w_proj3, b_proj3, tm=128, ti=256))
    ref3 = gpt2_mlp_ref(x3, w_fc3, b_fc3, w_proj3, b_proj3)
    assert out3.shape == (192, 128)
    assert jnp.allclose(out3, ref3, atol=3e-2, rtol=3e-2), "tiled-path mismatch vs reference"

    print("KERNEL_OK")
</pallas_src>

<mosaic_0001>
module attributes {stable_mosaic.version = 11 : i64} {
  func.func @_resident_kernel(%arg0: i32, %arg1: memref<8x32xf32, #tpu.memory_space<vmem>>, %arg2: memref<32x128xf32, #tpu.memory_space<vmem>>, %arg3: memref<1x128xf32, #tpu.memory_space<vmem>>, %arg4: memref<128x32xf32, #tpu.memory_space<vmem>>, %arg5: memref<1x32xf32, #tpu.memory_space<vmem>>, %arg6: memref<8x32xf32, #tpu.memory_space<vmem>>) attributes {dimension_semantics = [#tpu.dimension_semantics<parallel>], iteration_bounds = array<i64: 1>, scalar_prefetch = 0 : i64, scratch_operands = 0 : i64, tpu.core_type = #tpu.core_type<tc>, window_params = [{transform_indices = @transform_0, window_bounds = array<i64: 8, 32>}, {pipeline_mode = #tpu.pipeline_mode<synchronous>, transform_indices = @transform_1, window_bounds = array<i64: 32, 128>}, {pipeline_mode = #tpu.pipeline_mode<synchronous>, transform_indices = @transform_2, window_bounds = array<i64: 1, 128>}, {pipeline_mode = #tpu.pipeline_mode<synchronous>, transform_indices = @transform_3, window_bounds = array<i64: 128, 32>}, {pipeline_mode = #tpu.pipeline_mode<synchronous>, transform_indices = @transform_4, window_bounds = array<i64: 1, 32>}, {transform_indices = @transform_5, window_bounds = array<i64: 8, 32>}]} {
    %c0 = arith.constant 0 : index
    %c0_0 = arith.constant 0 : index
    %0 = vector.load %arg1[%c0, %c0_0] : memref<8x32xf32, #tpu.memory_space<vmem>>, vector<8x32xf32>
    %c0_1 = arith.constant 0 : index
    %c0_2 = arith.constant 0 : index
    %1 = vector.load %arg2[%c0_1, %c0_2] : memref<32x128xf32, #tpu.memory_space<vmem>>, vector<32x128xf32>
    %cst = arith.constant dense<0.000000e+00> : vector<8x128xf32>
    %2 = tpu.matmul %0, %1, %cst {dimension_numbers = #tpu.dot_dimension_numbers<[1], [0], [0], [1], [0, 0, 1, 1], [], []>} : vector<8x32xf32>, vector<32x128xf32>, vector<8x128xf32> -> vector<8x128xf32>
    %c0_3 = arith.constant 0 : index
    %c0_4 = arith.constant 0 : index
    %3 = vector.load %arg3[%c0_3, %c0_4] : memref<1x128xf32, #tpu.memory_space<vmem>>, vector<1x128xf32>
    %4 = vector.broadcast %3 : vector<1x128xf32> to vector<8x128xf32>
    %5 = arith.addf %2, %4 : vector<8x128xf32>
    %cst_5 = arith.constant 5.000000e-01 : f32
    %6 = vector.broadcast %cst_5 : f32 to vector<8x128xf32>
    %7 = arith.mulf %6, %5 : vector<8x128xf32>
    %8 = arith.mulf %5, %5 : vector<8x128xf32>
    %9 = arith.mulf %8, %5 : vector<8x128xf32>
    %cst_6 = arith.constant 4.471500e-02 : f32
    %10 = vector.broadcast %cst_6 : f32 to vector<8x128xf32>
    %11 = arith.mulf %10, %9 : vector<8x128xf32>
    %12 = arith.addf %5, %11 : vector<8x128xf32>
    %cst_7 = arith.constant 0.797884583 : f32
    %13 = vector.broadcast %cst_7 : f32 to vector<8x128xf32>
    %14 = arith.mulf %13, %12 : vector<8x128xf32>
    %15 = math.tanh %14 : vector<8x128xf32>
    %cst_8 = arith.constant 1.000000e+00 : f32
    %16 = vector.broadcast %cst_8 : f32 to vector<8x128xf32>
    %17 = arith.addf %16, %15 : vector<8x128xf32>
    %18 = arith.mulf %7, %17 : vector<8x128xf32>
    %c0_9 = arith.constant 0 : index
    %c0_10 = arith.constant 0 : index
    %19 = vector.load %arg4[%c0_9, %c0_10] : memref<128x32xf32, #tpu.memory_space<vmem>>, vector<128x32xf32>
    %cst_11 = arith.constant dense<0.000000e+00> : vector<8x32xf32>
    %20 = tpu.matmul %18, %19, %cst_11 {dimension_numbers = #tpu.dot_dimension_numbers<[1], [0], [0], [1], [0, 0, 1, 1], [], []>} : vector<8x128xf32>, vector<128x32xf32>, vector<8x32xf32> -> vector<8x32xf32>
    %c0_12 = arith.constant 0 : index
    %c0_13 = arith.constant 0 : index
    %21 = vector.load %arg5[%c0_12, %c0_13] : memref<1x32xf32, #tpu.memory_space<vmem>>, vector<1x32xf32>
    %22 = vector.broadcast %21 : vector<1x32xf32> to vector<8x32xf32>
    %23 = arith.addf %20, %22 : vector<8x32xf32>
    %c0_14 = arith.constant 0 : index
    %c0_15 = arith.constant 0 : index
    %24 = vector.load %arg6[%c0_14, %c0_15] : memref<8x32xf32, #tpu.memory_space<vmem>>, vector<8x32xf32>
    tpu.vector_store %arg6[%c0_14, %c0_15], %23 {strides = array<i32>} : memref<8x32xf32, #tpu.memory_space<vmem>>, vector<8x32xf32>,
    return
  }
  func.func @transform_0(%arg0: i32) -> (i32, i32) {
    %c0_i32 = arith.constant 0 : i32
    %c0_i32_0 = arith.constant 0 : i32
    return %arg0, %c0_i32 : i32, i32
  }
  func.func @transform_1(%arg0: i32) -> (i32, i32) {
    %c0_i32 = arith.constant 0 : i32
    %c0_i32_0 = arith.constant 0 : i32
    %c0_i32_1 = arith.constant 0 : i32
    return %c0_i32, %c0_i32_0 : i32, i32
  }
  func.func @transform_2(%arg0: i32) -> (i32, i32) {
    %c0_i32 = arith.constant 0 : i32
    %c0_i32_0 = arith.constant 0 : i32
    %c0_i32_1 = arith.constant 0 : i32
    return %c0_i32, %c0_i32_0 : i32, i32
  }
  func.func @transform_3(%arg0: i32) -> (i32, i32) {
    %c0_i32 = arith.constant 0 : i32
    %c0_i32_0 = arith.constant 0 : i32
    %c0_i32_1 = arith.constant 0 : i32
    return %c0_i32, %c0_i32_0 : i32, i32
  }
  func.func @transform_4(%arg0: i32) -> (i32, i32) {
    %c0_i32 = arith.constant 0 : i32
    %c0_i32_0 = arith.constant 0 : i32
    %c0_i32_1 = arith.constant 0 : i32
    return %c0_i32, %c0_i32_0 : i32, i32
  }
  func.func @transform_5(%arg0: i32) -> (i32, i32) {
    %c0_i32 = arith.constant 0 : i32
    %c0_i32_0 = arith.constant 0 : i32
    return %arg0, %c0_i32 : i32, i32
  }
}

module attributes {stable_mosaic.version = 11 : i64} {
  func.func @_resident_kernel(%arg0: i32, %arg1: memref<8x32xf32, #tpu.memory_space<vmem>>, %arg2: memref<32x128xf32, #tpu.memory_space<vmem>>, %arg3: memref<1x128xf32, #tpu.memory_space<vmem>>, %arg4: memref<128x32xf32, #tpu.memory_space<vmem>>, %arg5: memref<1x32xf32, #tpu.memory_space<vmem>>, %arg6: memref<8x32xf32, #tpu.memory_space<vmem>>) attributes {dimension_semantics = [#tpu.dimension_semantics<parallel>], iteration_bounds = array<i64: 1>, scalar_prefetch = 0 : i64, scratch_operands = 0 : i64, tpu.core_type = #tpu.core_type<tc>, window_params = [{transform_indices = @transform_0, window_bounds = array<i64: 8, 32>}, {pipeline_mode = #tpu.pipeline_mode<synchronous>, transform_indices = @transform_1, window_bounds = array<i64: 32, 128>}, {pipeline_mode = #tpu.pipeline_mode<synchronous>, transform_indices = @transform_2, window_bounds = array<i64: 1, 128>}, {pipeline_mode = #tpu.pipeline_mode<synchronous>, transform_indices = @transform_3, window_bounds = array<i64: 128, 32>}, {pipeline_mode = #tpu.pipeline_mode<synchronous>, transform_indices = @transform_4, window_bounds = array<i64: 1, 32>}, {transform_indices = @transform_5, window_bounds = array<i64: 8, 32>}]} {
    %c0 = arith.constant 0 : index
    %c0_0 = arith.constant 0 : index
    %0 = vector.load %arg1[%c0, %c0_0] : memref<8x32xf32, #tpu.memory_space<vmem>>, vector<8x32xf32>
    %c0_1 = arith.constant 0 : index
    %c0_2 = arith.constant 0 : index
    %1 = vector.load %arg2[%c0_1, %c0_2] : memref<32x128xf32, #tpu.memory_space<vmem>>, vector<32x128xf32>
    %cst = arith.constant dense<0.000000e+00> : vector<8x128xf32>
    %2 = tpu.matmul %0, %1, %cst {dimension_numbers = #tpu.dot_dimension_numbers<[1], [0], [0], [1], [0, 0, 1, 1], [], []>} : vector<8x32xf32>, vector<32x128xf32>, vector<8x128xf32> -> vector<8x128xf32>
    %c0_3 = arith.constant 0 : index
    %c0_4 = arith.constant 0 : index
    %3 = vector.load %arg3[%c0_3, %c0_4] : memref<1x128xf32, #tpu.memory_space<vmem>>, vector<1x128xf32>
    %4 = vector.broadcast %3 : vector<1x128xf32> to vector<8x128xf32>
    %5 = arith.addf %2, %4 : vector<8x128xf32>
    %cst_5 = arith.constant 5.000000e-01 : f32
    %6 = vector.broadcast %cst_5 : f32 to vector<8x128xf32>
    %7 = arith.mulf %6, %5 : vector<8x128xf32>
    %8 = arith.mulf %5, %5 : vector<8x128xf32>
    %9 = arith.mulf %8, %5 : vector<8x128xf32>
    %cst_6 = arith.constant 4.471500e-02 : f32
    %10 = vector.broadcast %cst_6 : f32 to vector<8x128xf32>
    %11 = arith.mulf %10, %9 : vector<8x128xf32>
    %12 = arith.addf %5, %11 : vector<8x128xf32>
    %cst_7 = arith.constant 0.797884583 : f32
    %13 = vector.broadcast %cst_7 : f32 to vector<8x128xf32>
    %14 = arith.mulf %13, %12 : vector<8x128xf32>
    %15 = math.tanh %14 : vector<8x128xf32>
    %cst_8 = arith.constant 1.000000e+00 : f32
    %16 = vector.broadcast %cst_8 : f32 to vector<8x128xf32>
    %17 = arith.addf %16, %15 : vector<8x128xf32>
    %18 = arith.mulf %7, %17 : vector<8x128xf32>
    %c0_9 = arith.constant 0 : index
    %c0_10 = arith.constant 0 : index
    %19 = vector.load %arg4[%c0_9, %c0_10] : memref<128x32xf32, #tpu.memory_space<vmem>>, vector<128x32xf32>
    %cst_11 = arith.constant dense<0.000000e+00> : vector<8x32xf32>
    %20 = tpu.matmul %18, %19, %cst_11 {dimension_numbers = #tpu.dot_dimension_numbers<[1], [0], [0], [1], [0, 0, 1, 1], [], []>} : vector<8x128xf32>, vector<128x32xf32>, vector<8x32xf32> -> vector<8x32xf32>
    %c0_12 = arith.constant 0 : index
    %c0_13 = arith.constant 0 : index
    %21 = vector.load %arg5[%c0_12, %c0_13] : memref<1x32xf32, #tpu.memory_space<vmem>>, vector<1x32xf32>
    %22 = vector.broadcast %21 : vector<1x32xf32> to vector<8x32xf32>
    %23 = arith.addf %20, %22 : vector<8x32xf32>
    %c0_14 = arith.constant 0 : index
    %c0_15 = arith.constant 0 : index
    %24 = vector.load %arg6[%c0_14, %c0_15] : memref<8x32xf32, #tpu.memory_space<vmem>>, vector<8x32xf32>
    tpu.vector_store %arg6[%c0_14, %c0_15], %23 {strides = array<i32>} : memref<8x32xf32, #tpu.memory_space<vmem>>, vector<8x32xf32>,
    return
  }
  func.func @transform_0(%arg0: i32) -> (i32, i32) {
    %c0_i32 = arith.constant 0 : i32
    %c0_i32_0 = arith.constant 0 : i32
    return %arg0, %c0_i32 : i32, i32
  }
  func.func @transform_1(%arg0: i32) -> (i32, i32) {
    %c0_i32 = arith.constant 0 : i32
    %c0_i32_0 = arith.constant 0 : i32
    %c0_i32_1 = arith.constant 0 : i32
    return %c0_i32, %c0_i32_0 : i32, i32
  }
  func.func @transform_2(%arg0: i32) -> (i32, i32) {
    %c0_i32 = arith.constant 0 : i32
    %c0_i32_0 = arith.constant 0 : i32
    %c0_i32_1 = arith.constant 0 : i32
    return %c0_i32, %c0_i32_0 : i32, i32
  }
  func.func @transform_3(%arg0: i32) -> (i32, i32) {
    %c0_i32 = arith.constant 0 : i32
    %c0_i32_0 = arith.constant 0 : i32
    %c0_i32_1 = arith.constant 0 : i32
    return %c0_i32, %c0_i32_0 : i32, i32
  }
  func.func @transform_4(%arg0: i32) -> (i32, i32) {
    %c0_i32 = arith.constant 0 : i32
    %c0_i32_0 = arith.constant 0 : i32
    %c0_i32_1 = arith.constant 0 : i32
    return %c0_i32, %c0_i32_0 : i32, i32
  }
  func.func @transform_5(%arg0: i32) -> (i32, i32) {
    %c0_i32 = arith.constant 0 : i32
    %c0_i32_0 = arith.constant 0 : i32
    return %arg0, %c0_i32 : i32, i32
  }
}

</mosaic_0001>

<bundles_post_ra>
// kernel: tpu_custom_call.1
= control target key start
LH: loop header
LB: loop body
LE: loop exit
PB: predicated region body
PF: predicated region fallthrough
CT: control target
= control target key end

     0   :  { %v355_v3 = vmov 0.0|0.0   ;;  %vm356_vm0 = vmmov 0   ;;  %v357_v6 = vmov 0.0   ;;  %s472_s0 = inlined_call_operand.vmem [shape: f32[8,32], index: 0, kind: input, shape index: {}]   ;;  %s473_s1 = inlined_call_operand.vmem [shape: f32[32,128], index: 1, kind: input, shape index: {}]   ;;  %s474_s2 = inlined_call_operand.vmem [shape: f32[1,128], index: 2, kind: input, shape index: {}]   ;;  %s475_s3 = inlined_call_operand.vmem [shape: f32[128,32], index: 3, kind: input, shape index: {}]   ;;  %s476_s4 = inlined_call_operand.vmem [shape: f32[1,32], index: 4, kind: input, shape index: {}]   ;;  %s477_s5 = inlined_call_operand.hbm [shape: f32[8,32], index: 5, kind: output, shape index: {}]  }
   0x1   :  { %v22_v0 = vld [vmem:[%s473_s1] sm:$0xff]  ;;  %v23_v1 = vld [vmem:[%s473_s1 + $0x8] sm:$0xff]  ;;  %v24_v2 = vld [vmem:[%s473_s1 + $0x10] sm:$0xff]  ;;  %295 = vmatprep.subr.bf16.mxu0 %v355_v3  ;;  %257 = vmatprep.mubr.msk.f32.mxu0 %vm356_vm0, %v357_v6 }
   0x2   :  { %v296_v4 = vpack.c.bf16 %v23_v1, %v22_v0  ;;  %v25_v5 = vld [vmem:[%s473_s1 + $0x18] sm:$0xff]  ;;  %v116_v7 = vld [vmem:[%s475_s3] sm:$0xff]  ;;  %301 = vmatprep.subr.bf16.mxu1 %v355_v3  ;;  %v117_v8 = vld [vmem:[%s475_s3 + $0x8] sm:$0xff]  ;;  %292 = vmatprep.mubr.msk.f32.mxu1 %vm356_vm0, %v357_v6 }
   0x3   :  { %10 = vsyncpa [#allocation3], 0  ;;  %v299_v9 = vpack.c.bf16 %v25_v5, %v24_v2  ;;  %v302_v10 = vpack.c.bf16 %v117_v8, %v116_v7  ;;  %v21_v11 = vld [vmem:[%s472_s0] sm:$0xff]  ;;  %vm33_vm1 = vcmask 261120   ;;  %v118_v12 = vld [vmem:[%s475_s3 + $0x10] sm:$0xff]  ;;  %s358_s10 = smov [#allocation2]  }
   0x4   :  { %297 = vmatpush3.bf16.msra.mxu0 %v296_v4  ;;  %v119_v13 = vld [vmem:[%s475_s3 + $0x18] sm:$0xff]  ;;  %v120_v15 = vld [vmem:[%s475_s3 + $0x20] sm:$0xff]  ;;  %v121_v16 = vld [vmem:[%s475_s3 + $0x28] sm:$0xff] }
   0x5   :  { %298 = vmatprep.subr.bf16.mxu0 %v355_v3  ;;  %303 = vmatpush3.bf16.msra.mxu1 %v302_v10  ;;  %v305_v14 = vpack.c.bf16 %v119_v13, %v118_v12  ;;  %v308_v17 = vpack.c.bf16 %v121_v16, %v120_v15  ;;  %v122_v18 = vld [vmem:[%s475_s3 + $0x30] sm:$0xff]  ;;  %v123_v19 = vld [vmem:[%s475_s3 + $0x38] sm:$0xff]  ;;  %v124_v21 = vld [vmem:[%s475_s3 + $0x40] sm:$0xff] }
   0x6   :  { %304 = vmatprep.subr.bf16.mxu1 %v355_v3  ;;  %v311_v20 = vpack.c.bf16 %v123_v19, %v122_v18  ;;  %v125_v22 = vld [vmem:[%s475_s3 + $0x48] sm:$0xff]  ;;  %v126_v24 = vld [vmem:[%s475_s3 + $0x50] sm:$0xff]  ;;  %v127_v25 = vld [vmem:[%s475_s3 + $0x58] sm:$0xff] }
   0x7   :  { %v314_v23 = vpack.c.bf16 %v125_v22, %v124_v21  ;;  %v317_v26 = vpack.c.bf16 %v127_v25, %v126_v24  ;;  %v128_v27 = vld [vmem:[%s475_s3 + $0x60] sm:$0xff]  ;;  %v129_v28 = vld [vmem:[%s475_s3 + $0x68] sm:$0xff]  ;;  %v130_v30 = vld [vmem:[%s475_s3 + $0x70] sm:$0xff] }
   0x8   :  { %300 = vmatpush3.bf16.msra.mxu0 %v299_v9  ;;  %v320_v29 = vpack.c.bf16 %v129_v28, %v128_v27  ;;  %v131_v31 = vld [vmem:[%s475_s3 + $0x78] sm:$0xff]  ;;  %v224_v33 = vld [vmem:[%s474_s2] ss:$0 sm:$0xff]  ;;  %s216_s2 = sshll.u32 %s358_s10, 4  ;;  %s217_s2 = int_to_ptr.vmem [resolvable:$true] %s216_s2 }
   0x9   :  { %306 = vmatpush3.bf16.msra.mxu1 %v305_v14  ;;  %v323_v32 = vpack.c.bf16 %v131_v31, %v130_v30  ;;  %v226_v46 = vld [vmem:[%s476_s4] ss:$0 sm:$0xff]  ;;  %s331_s11 = scalar_lea.vmem %s217_s2, 128  ;;  %p336_p1 = scmp.lt.s32.totalorder %s217_s2, %s217_s2 }
   0xa   :  { %307 = vmatprep.subr.bf16.mxu1 %v355_v3  ;;  %p332_p0 = scmp.ne.s32.totalorder %s217_s2, %s331_s11  ;;  %p337_p2 = scmp.lt.s32.totalorder %s331_s11, %s331_s11 }
   0xb   :  { %258 = vmatmul.mubr.msk.f32.vlgmr.msra.gmra.mrb[0].mxu0 %vm33_vm1, %v21_v11 }
   0xc   :  { %p338_p3 = por %p337_p2, %p336_p1 }
   0xd   :  { %309 = vmatpush3.bf16.msra.mxu1 %v308_v17 }
   0xe   :  { %310 = vmatprep.subr.bf16.mxu1 %v355_v3  ;;  %p339_p4 = pnand %p338_p3, %p332_p0 }
  0x11   :  { %312 = vmatpush3.bf16.msra.mxu1 %v311_v20 }
  0x12   :  { %313 = vmatprep.subr.bf16.mxu1 %v355_v3 }
  0x15   :  { %315 = vmatpush3.bf16.msra.mxu1 %v314_v23 }
  0x16   :  { %316 = vmatprep.subr.bf16.mxu1 %v355_v3 }
  0x19   :  { %318 = vmatpush3.bf16.msra.mxu1 %v317_v26 }
  0x1a   :  { %319 = vmatprep.subr.bf16.mxu1 %v355_v3 }
  0x1d   :  { %321 = vmatpush3.bf16.msra.mxu1 %v320_v29 }
  0x1e   :  { %322 = vmatprep.subr.bf16.mxu1 %v355_v3 }
  0x21   :  { %324 = vmatpush3.bf16.msra.mxu1 %v323_v32 }
  0xde   :  { %v103_v34 = vpop.f32.mrb[0].mxu0 }
  0xdf   :  { %v104_v35 = vadd.f32 %v224_v33, %v103_v34  ;;  %v259_v36 = vpop.f32.mrb[1].mxu0 }
  0xe1   :  { %v108_v37 = vmul.f32 %v104_v35, %v104_v35  ;;  %v107_v43 = vmul.f32 0.5, %v104_v35 }
  0xe3   :  { %v109_v38 = vmul.f32 %v108_v37, %v104_v35 }
  0xe5   :  { %v110_v39 = vmul.f32 0.044715, %v109_v38 }
  0xe7   :  { %v111_v40 = vadd.f32 %v110_v39, %v104_v35 }
  0xe9   :  { %v112_v41 = vmul.f32 0.7978846, %v111_v40 }
  0xeb   :  { %329 = vtanh.f32 %v112_v41 }
  0xf5   :  { %v330_v42 = vpop.eup %329 }
  0xf6   :  { %v114_v44 = vadd.f32 1.0, %v330_v42 }
  0xf8   :  { %v115_v45 = vmul.f32 %v114_v44, %v107_v43 }
  0xfa   :  { %293 = vmatmul.mubr.f32.vlgmr.msra.gmra.mrb[0].mxu1 %v115_v45 }
 0x1cd   :  { %v205_v47 = vpop.f32.mrb[0].mxu1 }
 0x1ce   :  { %v206_v48 = vadd.f32 %v226_v46, %v205_v47  ;;  %v294_v49 = vpop.f32.mrb[1].mxu1 }
 0x1d0   :  { %209 = vst.msk [vmem:[#allocation2] sm:$0xff] %vm33_vm1, %v206_v48 }
 0x1d1   :  { %342 = shalt.err (!%p339_p4)
}
 0x1d2   :  { %s343_s13 = scalar_lea.hbm %s477_s5, 128 }
 0x1d3   :  { %p344_p5 = scmp.ne.s32.totalorder %s477_s5, %s343_s13  ;;  %p347_p6 = scmp.lt.u32.totalorder %s343_s13, %s477_s5 }
 0x1d5   :  { %p349_p7 = pnand %p347_p6, %p344_p5 }
 0x1d7   :  { %352 = shalt.err (!%p349_p7)
}
 0x1d8   :  { %219 = dma.vmem_to_hbm [thread:$0]  %s217_s2, 128, %s477_s5, [#allocation3]  }
 0x1d9   :  { %353 = dma.done.wait [#allocation3], 128  }
 0x1da   :  { %354 = vsyncadd [#allocation3], 4294967168 }
 0x1db   :  { %223 = vsyncpa [#allocation3], 1 }

// kernel: tpu_custom_call.1
= control target key start
LH: loop header
LB: loop body
LE: loop exit
PB: predicated region body
PF: predicated region fallthrough
CT: control target
= control target key end

     0   :  { %v355_v3 = vmov 0.0|0.0   ;;  %vm356_vm0 = vmmov 0   ;;  %v357_v6 = vmov 0.0   ;;  %s472_s0 = inlined_call_operand.vmem [shape: f32[8,32], index: 0, kind: input, shape index: {}]   ;;  %s473_s1 = inlined_call_operand.vmem [shape: f32[32,128], index: 1, kind: input, shape index: {}]   ;;  %s474_s2 = inlined_call_operand.vmem [shape: f32[1,128], index: 2, kind: input, shape index: {}]   ;;  %s475_s3 = inlined_call_operand.vmem [shape: f32[128,32], index: 3, kind: input, shape index: {}]   ;;  %s476_s4 = inlined_call_operand.vmem [shape: f32[1,32], index: 4, kind: input, shape index: {}]   ;;  %s477_s5 = inlined_call_operand.hbm [shape: f32[8,32], index: 5, kind: output, shape index: {}]  }
   0x1   :  { %v22_v0 = vld [vmem:[%s473_s1] sm:$0xff]  ;;  %v23_v1 = vld [vmem:[%s473_s1 + $0x8] sm:$0xff]  ;;  %v24_v2 = vld [vmem:[%s473_s1 + $0x10] sm:$0xff]  ;;  %295 = vmatprep.subr.bf16.mxu0 %v355_v3  ;;  %257 = vmatprep.mubr.msk.f32.mxu0 %vm356_vm0, %v357_v6 }
   0x2   :  { %v296_v4 = vpack.c.bf16 %v23_v1, %v22_v0  ;;  %v25_v5 = vld [vmem:[%s473_s1 + $0x18] sm:$0xff]  ;;  %v116_v7 = vld [vmem:[%s475_s3] sm:$0xff]  ;;  %301 = vmatprep.subr.bf16.mxu1 %v355_v3  ;;  %v117_v8 = vld [vmem:[%s475_s3 + $0x8] sm:$0xff]  ;;  %292 = vmatprep.mubr.msk.f32.mxu1 %vm356_vm0, %v357_v6 }
   0x3   :  { %10 = vsyncpa [#allocation3], 0  ;;  %v299_v9 = vpack.c.bf16 %v25_v5, %v24_v2  ;;  %v302_v10 = vpack.c.bf16 %v117_v8, %v116_v7  ;;  %v21_v11 = vld [vmem:[%s472_s0] sm:$0xff]  ;;  %vm33_vm1 = vcmask 261120   ;;  %v118_v12 = vld [vmem:[%s475_s3 + $0x10] sm:$0xff]  ;;  %s358_s10 = smov [#allocation2]  }
   0x4   :  { %297 = vmatpush3.bf16.msra.mxu0 %v296_v4  ;;  %v119_v13 = vld [vmem:[%s475_s3 + $0x18] sm:$0xff]  ;;  %v120_v15 = vld [vmem:[%s475_s3 + $0x20] sm:$0xff]  ;;  %v121_v16 = vld [vmem:[%s475_s3 + $0x28] sm:$0xff] }
   0x5   :  { %298 = vmatprep.subr.bf16.mxu0 %v355_v3  ;;  %303 = vmatpush3.bf16.msra.mxu1 %v302_v10  ;;  %v305_v14 = vpack.c.bf16 %v119_v13, %v118_v12  ;;  %v308_v17 = vpack.c.bf16 %v121_v16, %v120_v15  ;;  %v122_v18 = vld [vmem:[%s475_s3 + $0x30] sm:$0xff]  ;;  %v123_v19 = vld [vmem:[%s475_s3 + $0x38] sm:$0xff]  ;;  %v124_v21 = vld [vmem:[%s475_s3 + $0x40] sm:$0xff] }
   0x6   :  { %304 = vmatprep.subr.bf16.mxu1 %v355_v3  ;;  %v311_v20 = vpack.c.bf16 %v123_v19, %v122_v18  ;;  %v125_v22 = vld [vmem:[%s475_s3 + $0x48] sm:$0xff]  ;;  %v126_v24 = vld [vmem:[%s475_s3 + $0x50] sm:$0xff]  ;;  %v127_v25 = vld [vmem:[%s475_s3 + $0x58] sm:$0xff] }
   0x7   :  { %v314_v23 = vpack.c.bf16 %v125_v22, %v124_v21  ;;  %v317_v26 = vpack.c.bf16 %v127_v25, %v126_v24  ;;  %v128_v27 = vld [vmem:[%s475_s3 + $0x60] sm:$0xff]  ;;  %v129_v28 = vld [vmem:[%s475_s3 + $0x68] sm:$0xff]  ;;  %v130_v30 = vld [vmem:[%s475_s3 + $0x70] sm:$0xff] }
   0x8   :  { %300 = vmatpush3.bf16.msra.mxu0 %v299_v9  ;;  %v320_v29 = vpack.c.bf16 %v129_v28, %v128_v27  ;;  %v131_v31 = vld [vmem:[%s475_s3 + $0x78] sm:$0xff]  ;;  %v224_v33 = vld [vmem:[%s474_s2] ss:$0 sm:$0xff]  ;;  %s216_s2 = sshll.u32 %s358_s10, 4  ;;  %s217_s2 = int_to_ptr.vmem [resolvable:$true] %s216_s2 }
   0x9   :  { %306 = vmatpush3.bf16.msra.mxu1 %v305_v14  ;;  %v323_v32 = vpack.c.bf16 %v131_v31, %v130_v30  ;;  %v226_v46 = vld [vmem:[%s476_s4] ss:$0 sm:$0xff]  ;;  %s331_s11 = scalar_lea.vmem %s217_s2, 128  ;;  %p336_p1 = scmp.lt.s32.totalorder %s217_s2, %s217_s2 }
   0xa   :  { %307 = vmatprep.subr.bf16.mxu1 %v355_v3  ;;  %p332_p0 = scmp.ne.s32.totalorder %s217_s2, %s331_s11  ;;  %p337_p2 = scmp.lt.s32.totalorder %s331_s11, %s331_s11 }
   0xb   :  { %258 = vmatmul.mubr.msk.f32.vlgmr.msra.gmra.mrb[0].mxu0 %vm33_vm1, %v21_v11 }
   0xc   :  { %p338_p3 = por %p337_p2, %p336_p1 }
   0xd   :  { %309 = vmatpush3.bf16.msra.mxu1 %v308_v17 }
   0xe   :  { %310 = vmatprep.subr.bf16.mxu1 %v355_v3  ;;  %p339_p4 = pnand %p338_p3, %p332_p0 }
  0x11   :  { %312 = vmatpush3.bf16.msra.mxu1 %v311_v20 }
  0x12   :  { %313 = vmatprep.subr.bf16.mxu1 %v355_v3 }
  0x15   :  { %315 = vmatpush3.bf16.msra.mxu1 %v314_v23 }
  0x16   :  { %316 = vmatprep.subr.bf16.mxu1 %v355_v3 }
  0x19   :  { %318 = vmatpush3.bf16.msra.mxu1 %v317_v26 }
  0x1a   :  { %319 = vmatprep.subr.bf16.mxu1 %v355_v3 }
  0x1d   :  { %321 = vmatpush3.bf16.msra.mxu1 %v320_v29 }
  0x1e   :  { %322 = vmatprep.subr.bf16.mxu1 %v355_v3 }
  0x21   :  { %324 = vmatpush3.bf16.msra.mxu1 %v323_v32 }
  0xde   :  { %v103_v34 = vpop.f32.mrb[0].mxu0 }
  0xdf   :  { %v104_v35 = vadd.f32 %v224_v33, %v103_v34  ;;  %v259_v36 = vpop.f32.mrb[1].mxu0 }
  0xe1   :  { %v108_v37 = vmul.f32 %v104_v35, %v104_v35  ;;  %v107_v43 = vmul.f32 0.5, %v104_v35 }
  0xe3   :  { %v109_v38 = vmul.f32 %v108_v37, %v104_v35 }
  0xe5   :  { %v110_v39 = vmul.f32 0.044715, %v109_v38 }
  0xe7   :  { %v111_v40 = vadd.f32 %v110_v39, %v104_v35 }
  0xe9   :  { %v112_v41 = vmul.f32 0.7978846, %v111_v40 }
  0xeb   :  { %329 = vtanh.f32 %v112_v41 }
  0xf5   :  { %v330_v42 = vpop.eup %329 }
  0xf6   :  { %v114_v44 = vadd.f32 1.0, %v330_v42 }
  0xf8   :  { %v115_v45 = vmul.f32 %v114_v44, %v107_v43 }
  0xfa   :  { %293 = vmatmul.mubr.f32.vlgmr.msra.gmra.mrb[0].mxu1 %v115_v45 }
 0x1cd   :  { %v205_v47 = vpop.f32.mrb[0].mxu1 }
 0x1ce   :  { %v206_v48 = vadd.f32 %v226_v46, %v205_v47  ;;  %v294_v49 = vpop.f32.mrb[1].mxu1 }
 0x1d0   :  { %209 = vst.msk [vmem:[#allocation2] sm:$0xff] %vm33_vm1, %v206_v48 }
 0x1d1   :  { %342 = shalt.err (!%p339_p4)
}
 0x1d2   :  { %s343_s13 = scalar_lea.hbm %s477_s5, 128 }
 0x1d3   :  { %p344_p5 = scmp.ne.s32.totalorder %s477_s5, %s343_s13  ;;  %p347_p6 = scmp.lt.u32.totalorder %s343_s13, %s477_s5 }
 0x1d5   :  { %p349_p7 = pnand %p347_p6, %p344_p5 }
 0x1d7   :  { %352 = shalt.err (!%p349_p7)
}
 0x1d8   :  { %219 = dma.vmem_to_hbm [thread:$0]  %s217_s2, 128, %s477_s5, [#allocation3]  }
 0x1d9   :  { %353 = dma.done.wait [#allocation3], 128  }
 0x1da   :  { %354 = vsyncadd [#allocation3], 4294967168 }
 0x1db   :  { %223 = vsyncpa [#allocation3], 1 }

</bundles_post_ra>
